<compile_context>
chip_gen: v7x
topology: tpu7x:2x2x1
jax: 0.10.0
libtpu: 0.0.40
codegen_flags: <defaults>
</compile_context>

<pallas_src>
import jax
import jax.numpy as jnp
from jax.experimental import pallas as pl
from jax.experimental.pallas import tpu as pltpu

_HEAD_PAD = 128  # lane-dense fused-head width kept in VMEM


def _round_up(x, m):
    return (x + m - 1) // m * m


def _make_bgnerf_kernel(D, out_pad):
    """Kernel body: D hidden Linear+ReLU layers, then one fused head matmul.

    The fused head packs rgb (cols 0:3) and optional semantics
    (cols 3:3+n_classes) into one 128-wide weight; only the first `out_pad`
    columns are post-processed and stored (sigmoid on cols < 3).
    """

    def kernel(*refs):
        # refs = (x, w_1, b_1, ..., w_D, b_D, head_w, head_b, out)
        x_ref = refs[0]
        idx = 1

        h = x_ref[...]
        # D hidden layers: Linear + ReLU (f32 accumulation on the MXU).
        for _ in range(D):
            w = refs[idx][...]
            b = refs[idx + 1][...]
            idx += 2
            lhs = h if h.dtype == w.dtype else h.astype(w.dtype)
            acc = jnp.dot(lhs, w, preferred_element_type=jnp.float32)
            h = jnp.maximum(acc + b.astype(jnp.float32), 0.0)

        # Fused rgb(+sem) head: one 128-lane matmul in VMEM, then slice to the
        # narrow output width before the (cheap) elementwise tail and store.
        hw = refs[idx][...]
        hb = refs[idx + 1][...]
        idx += 2
        lhs = h if h.dtype == hw.dtype else h.astype(hw.dtype)
        z = jnp.dot(lhs, hw, preferred_element_type=jnp.float32)
        z = z[:, :out_pad] + hb[:, :out_pad].astype(jnp.float32)
        col = jax.lax.broadcasted_iota(jnp.int32, z.shape, dimension=1)
        out = jnp.where(col < 3, jax.nn.sigmoid(z), z)

        out_ref = refs[idx]
        out_ref[...] = out.astype(out_ref.dtype)

    return kernel


def init_bgnerf_params(key, D, W, in_channels_dir=27, with_semantics=False,
                       n_classes=6, dtype=jnp.float32):
    """Deterministic synthetic parameters matching the PyTorch module shapes
    (stored as (in, out) instead of PyTorch's (out, in))."""
    params = {"layers": [], "rgb": None, "sem": None}
    keys = jax.random.split(key, 2 * D + 4)
    k = 0
    in_dim = in_channels_dir
    for _ in range(D):
        w = jax.random.normal(keys[k], (in_dim, W), dtype) * 0.1
        b = jax.random.normal(keys[k + 1], (1, W), dtype) * 0.01
        params["layers"].append((w, b))
        k += 2
        in_dim = W
    rgb_w = jax.random.normal(keys[k], (W, 3), dtype) * 0.1
    rgb_b = jax.random.normal(keys[k + 1], (1, 3), dtype) * 0.01
    params["rgb"] = (rgb_w, rgb_b)
    k += 2
    if with_semantics:
        sem_w = jax.random.normal(keys[k], (W, n_classes), dtype) * 0.1
        sem_b = jax.random.normal(keys[k + 1], (1, n_classes), dtype) * 0.01
        params["sem"] = (sem_w, sem_b)
    return params


def bgnerf_forward(x, params, *, D, with_semantics, n_classes,
                   block_b=4096, compute_dtype=jnp.bfloat16, w_pad=128):
    """Pallas BgNeRF forward.

    Handles arbitrary B by tiling/padding the batch; weights are padded to a
    lane-dense hidden width and cast to `compute_dtype` once.
    Returns (B, 3[+n_classes]) in x.dtype.
    """
    B, C = x.shape
    W = params["layers"][0][0].shape[1]
    out_dim = 3 + (n_classes if with_semantics else 0)
    assert out_dim <= _HEAD_PAD, "rgb+sem must fit in the 128-wide fused head"
    out_pad = _round_up(out_dim, 8)          # narrow HBM output width
    W_pad = _round_up(W, w_pad)              # lane-dense hidden width
    C_pad = _round_up(C, 8)                  # small K pad (27 -> 32)

    # --- batch tiling: >=2 grid steps (v7x dual-TC) and tiny padding waste ---
    n_steps = max(2, pl.cdiv(B, block_b))
    block_b_eff = _round_up(pl.cdiv(B, n_steps), 8)
    B_pad = n_steps * block_b_eff

    x_p = x
    if B_pad != B or C_pad != C:
        x_p = jnp.pad(x, ((0, B_pad - B), (0, C_pad - C)))

    # --- pad + cast hidden layers (weights -> compute_dtype, biases f32) ---
    layers = []
    k_pad = C_pad
    for (w, b) in params["layers"]:
        k_in = w.shape[0]
        w_p = jnp.zeros((k_pad, W_pad), compute_dtype)
        w_p = w_p.at[:k_in, :W].set(w.astype(compute_dtype))
        b_p = jnp.zeros((1, W_pad), jnp.float32)
        b_p = b_p.at[:, :W].set(b.astype(jnp.float32))
        layers.append((w_p, b_p))
        k_pad = W_pad

    # --- fuse rgb (+ sem) heads into one lane-dense (W_pad, 128) weight ---
    rgb_w, rgb_b = params["rgb"]
    head_w = jnp.zeros((W_pad, _HEAD_PAD), compute_dtype)
    head_w = head_w.at[:W, :3].set(rgb_w.astype(compute_dtype))
    head_b = jnp.zeros((1, _HEAD_PAD), jnp.float32)
    head_b = head_b.at[:, :3].set(rgb_b.astype(jnp.float32))
    if with_semantics:
        sem_w, sem_b = params["sem"]
        head_w = head_w.at[:W, 3:3 + n_classes].set(sem_w.astype(compute_dtype))
        head_b = head_b.at[:, 3:3 + n_classes].set(sem_b.astype(jnp.float32))

    # x tiled over batch; weights/biases are small full blocks whose block
    # index never changes (the pipeline keeps them resident in VMEM).
    args = [x_p]
    in_specs = [pl.BlockSpec((block_b_eff, C_pad), lambda i: (i, 0))]

    def full_spec(arr):
        return pl.BlockSpec(arr.shape, lambda i: (0, 0))

    for (w, b) in layers + [(head_w, head_b)]:
        args += [w, b]
        in_specs += [full_spec(w), full_spec(b)]

    kernel = _make_bgnerf_kernel(D, out_pad)

    fn = pl.pallas_call(
        kernel,
        out_shape=jax.ShapeDtypeStruct((B_pad, out_pad), x.dtype),
        grid_spec=pltpu.PrefetchScalarGridSpec(
            num_scalar_prefetch=0,
            grid=(n_steps,),
            in_specs=in_specs,
            out_specs=pl.BlockSpec((block_b_eff, out_pad), lambda i: (i, 0)),
        ),
        compiler_params=pltpu.CompilerParams(
            dimension_semantics=("parallel",),
            vmem_limit_bytes=48 * 1024 * 1024,
        ),
    )
    out_padded = fn(*args)
    return out_padded[:B, :out_dim]


def bgnerf_reference(x, params, *, with_semantics):
    """Pure-JAX f32 reference mirroring the PyTorch forward."""
    h = x
    for (w, b) in params["layers"]:
        h = jnp.maximum(h @ w + b, 0.0)
    rgb_w, rgb_b = params["rgb"]
    out = jax.nn.sigmoid(h @ rgb_w + rgb_b)
    if with_semantics:
        sem_w, sem_b = params["sem"]
        sem = h @ sem_w + sem_b
        out = jnp.concatenate([out, sem], axis=-1)
    return out


if __name__ == "__main__":
    key = jax.random.PRNGKey(0)
    D, W, C, n_classes = 2, 32, 27, 6
    kx, kp, kx2, kp2, kx3, kp3 = jax.random.split(key, 6)

    # --- test 1: with semantics, f32 compute path (tight numerical check) ---
    B = 16
    x = jax.random.normal(kx, (B, C), jnp.float32)
    params = init_bgnerf_params(kp, D, W, in_channels_dir=C,
                                with_semantics=True, n_classes=n_classes)
    out = bgnerf_forward(x, params, D=D, with_semantics=True,
                         n_classes=n_classes, compute_dtype=jnp.float32)
    out = jax.block_until_ready(out)
    ref = bgnerf_reference(x, params, with_semantics=True)
    assert out.shape == (B, 3 + n_classes), out.shape
    assert jnp.allclose(out, ref, atol=1e-4, rtol=1e-4), (
        float(jnp.max(jnp.abs(out - ref))))

    # --- test 2: rgb-only, bf16 weights, multi-step grid + batch padding ---
    B2 = 40
    x2 = jax.random.normal(kx2, (B2, C), jnp.float32)
    params2 = init_bgnerf_params(kp2, D, W, in_channels_dir=C,
                                 with_semantics=False)
    out2 = bgnerf_forward(x2, params2, D=D, with_semantics=False,
                          n_classes=n_classes, block_b=16,
                          compute_dtype=jnp.bfloat16)
    out2 = jax.block_until_ready(out2)
    ref2 = bgnerf_reference(x2, params2, with_semantics=False)
    assert out2.shape == (B2, 3), out2.shape
    assert jnp.allclose(out2, ref2, atol=5e-2, rtol=5e-2), (
        float(jnp.max(jnp.abs(out2 - ref2))))

    # --- test 3: with semantics, bf16 weights, default (large) batch tile ---
    B3 = 300
    x3 = jax.random.normal(kx3, (B3, C), jnp.float32)
    params3 = init_bgnerf_params(kp3, D, W, in_channels_dir=C,
                                 with_semantics=True, n_classes=n_classes)
    out3 = bgnerf_forward(x3, params3, D=D, with_semantics=True,
                          n_classes=n_classes, compute_dtype=jnp.bfloat16)
    out3 = jax.block_until_ready(out3)
    ref3 = bgnerf_reference(x3, params3, with_semantics=True)
    assert out3.shape == (B3, 3 + n_classes), out3.shape
    assert jnp.allclose(out3, ref3, atol=5e-2, rtol=5e-2), (
        float(jnp.max(jnp.abs(out3 - ref3))))

    print("KERNEL_OK")
</pallas_src>

<mosaic_0001>
module attributes {stable_mosaic.version = 11 : i64} {
  func.func @kernel(%arg0: i32, %arg1: memref<8x32xf32, #tpu.memory_space<vmem>>, %arg2: memref<32x128xf32, #tpu.memory_space<vmem>>, %arg3: memref<1x128xf32, #tpu.memory_space<vmem>>, %arg4: memref<128x128xf32, #tpu.memory_space<vmem>>, %arg5: memref<1x128xf32, #tpu.memory_space<vmem>>, %arg6: memref<128x128xf32, #tpu.memory_space<vmem>>, %arg7: memref<1x128xf32, #tpu.memory_space<vmem>>, %arg8: memref<8x16xf32, #tpu.memory_space<vmem>>) attributes {dimension_semantics = [#tpu.dimension_semantics<parallel>], iteration_bounds = array<i64: 2>, scalar_prefetch = 0 : i64, scratch_operands = 0 : i64, tpu.core_type = #tpu.core_type<tc>, window_params = [{transform_indices = @transform_0, window_bounds = array<i64: 8, 32>}, {pipeline_mode = #tpu.pipeline_mode<synchronous>, transform_indices = @transform_1, window_bounds = array<i64: 32, 128>}, {pipeline_mode = #tpu.pipeline_mode<synchronous>, transform_indices = @transform_2, window_bounds = array<i64: 1, 128>}, {pipeline_mode = #tpu.pipeline_mode<synchronous>, transform_indices = @transform_3, window_bounds = array<i64: 128, 128>}, {pipeline_mode = #tpu.pipeline_mode<synchronous>, transform_indices = @transform_4, window_bounds = array<i64: 1, 128>}, {pipeline_mode = #tpu.pipeline_mode<synchronous>, transform_indices = @transform_5, window_bounds = array<i64: 128, 128>}, {pipeline_mode = #tpu.pipeline_mode<synchronous>, transform_indices = @transform_6, window_bounds = array<i64: 1, 128>}, {transform_indices = @transform_7, window_bounds = array<i64: 8, 16>}]} {
    %c0 = arith.constant 0 : index
    %c0_0 = arith.constant 0 : index
    %0 = vector.load %arg1[%c0, %c0_0] : memref<8x32xf32, #tpu.memory_space<vmem>>, vector<8x32xf32>
    %c0_1 = arith.constant 0 : index
    %c0_2 = arith.constant 0 : index
    %1 = vector.load %arg2[%c0_1, %c0_2] : memref<32x128xf32, #tpu.memory_space<vmem>>, vector<32x128xf32>
    %c0_3 = arith.constant 0 : index
    %c0_4 = arith.constant 0 : index
    %2 = vector.load %arg3[%c0_3, %c0_4] : memref<1x128xf32, #tpu.memory_space<vmem>>, vector<1x128xf32>
    %cst = arith.constant dense<0.000000e+00> : vector<8x128xf32>
    %3 = tpu.matmul %0, %1, %cst {dimension_numbers = #tpu.dot_dimension_numbers<[1], [0], [0], [1], [0, 0, 1, 1], [], []>} : vector<8x32xf32>, vector<32x128xf32>, vector<8x128xf32> -> vector<8x128xf32>
    %4 = vector.broadcast %2 : vector<1x128xf32> to vector<8x128xf32>
    %5 = arith.addf %3, %4 : vector<8x128xf32>
    %cst_5 = arith.constant 0.000000e+00 : f32
    %6 = vector.broadcast %cst_5 : f32 to vector<8x128xf32>
    %7 = arith.maximumf %5, %6 : vector<8x128xf32>
    %c0_6 = arith.constant 0 : index
    %c0_7 = arith.constant 0 : index
    %8 = vector.load %arg4[%c0_6, %c0_7] : memref<128x128xf32, #tpu.memory_space<vmem>>, vector<128x128xf32>
    %c0_8 = arith.constant 0 : index
    %c0_9 = arith.constant 0 : index
    %9 = vector.load %arg5[%c0_8, %c0_9] : memref<1x128xf32, #tpu.memory_space<vmem>>, vector<1x128xf32>
    %cst_10 = arith.constant dense<0.000000e+00> : vector<8x128xf32>
    %10 = tpu.matmul %7, %8, %cst_10 {dimension_numbers = #tpu.dot_dimension_numbers<[1], [0], [0], [1], [0, 0, 1, 1], [], []>} : vector<8x128xf32>, vector<128x128xf32>, vector<8x128xf32> -> vector<8x128xf32>
    %11 = vector.broadcast %9 : vector<1x128xf32> to vector<8x128xf32>
    %12 = arith.addf %10, %11 : vector<8x128xf32>
    %cst_11 = arith.constant 0.000000e+00 : f32
    %13 = vector.broadcast %cst_11 : f32 to vector<8x128xf32>
    %14 = arith.maximumf %12, %13 : vector<8x128xf32>
    %c0_12 = arith.constant 0 : index
    %c0_13 = arith.constant 0 : index
    %15 = vector.load %arg6[%c0_12, %c0_13] : memref<128x128xf32, #tpu.memory_space<vmem>>, vector<128x128xf32>
    %c0_14 = arith.constant 0 : index
    %c0_15 = arith.constant 0 : index
    %16 = vector.load %arg7[%c0_14, %c0_15] : memref<1x128xf32, #tpu.memory_space<vmem>>, vector<1x128xf32>
    %cst_16 = arith.constant dense<0.000000e+00> : vector<8x128xf32>
    %17 = tpu.matmul %14, %15, %cst_16 {dimension_numbers = #tpu.dot_dimension_numbers<[1], [0], [0], [1], [0, 0, 1, 1], [], []>} : vector<8x128xf32>, vector<128x128xf32>, vector<8x128xf32> -> vector<8x128xf32>
    %18 = vector.extract_strided_slice %17 {offsets = [0, 0], sizes = [8, 16], strides = [1, 1]} : vector<8x128xf32> to vector<8x16xf32>
    %19 = vector.extract_strided_slice %16 {offsets = [0, 0], sizes = [1, 16], strides = [1, 1]} : vector<1x128xf32> to vector<1x16xf32>
    %20 = vector.broadcast %19 : vector<1x16xf32> to vector<8x16xf32>
    %21 = arith.addf %18, %20 : vector<8x16xf32>
    %22 = tpu.iota {dimensions = array<i32: 1>} : vector<8x16xi32>
    %c3_i32 = arith.constant 3 : i32
    %23 = vector.broadcast %c3_i32 : i32 to vector<8x16xi32>
    %24 = arith.cmpi slt, %22, %23 : vector<8x16xi32>
    %25 = arith.negf %21 : vector<8x16xf32>
    %26 = math.exp %25 : vector<8x16xf32>
    %cst_17 = arith.constant 1.000000e+00 : f32
    %27 = vector.broadcast %cst_17 : f32 to vector<8x16xf32>
    %28 = arith.addf %27, %26 : vector<8x16xf32>
    %29 = arith.divf %27, %28 : vector<8x16xf32>
    %30 = arith.select %24, %29, %21 : vector<8x16xi1>, vector<8x16xf32>
    %c0_18 = arith.constant 0 : index
    %c0_19 = arith.constant 0 : index
    %31 = vector.load %arg8[%c0_18, %c0_19] : memref<8x16xf32, #tpu.memory_space<vmem>>, vector<8x16xf32>
    tpu.vector_store %arg8[%c0_18, %c0_19], %30 {strides = array<i32>} : memref<8x16xf32, #tpu.memory_space<vmem>>, vector<8x16xf32>,
    return
  }
  func.func @transform_0(%arg0: i32) -> (i32, i32) {
    %c0_i32 = arith.constant 0 : i32
    %c0_i32_0 = arith.constant 0 : i32
    return %arg0, %c0_i32 : i32, i32
  }
  func.func @transform_1(%arg0: i32) -> (i32, i32) {
    %c0_i32 = arith.constant 0 : i32
    %c0_i32_0 = arith.constant 0 : i32
    %c0_i32_1 = arith.constant 0 : i32
    return %c0_i32, %c0_i32_0 : i32, i32
  }
  func.func @transform_2(%arg0: i32) -> (i32, i32) {
    %c0_i32 = arith.constant 0 : i32
    %c0_i32_0 = arith.constant 0 : i32
    %c0_i32_1 = arith.constant 0 : i32
    return %c0_i32, %c0_i32_0 : i32, i32
  }
  func.func @transform_3(%arg0: i32) -> (i32, i32) {
    %c0_i32 = arith.constant 0 : i32
    %c0_i32_0 = arith.constant 0 : i32
    %c0_i32_1 = arith.constant 0 : i32
    return %c0_i32, %c0_i32_0 : i32, i32
  }
  func.func @transform_4(%arg0: i32) -> (i32, i32) {
    %c0_i32 = arith.constant 0 : i32
    %c0_i32_0 = arith.constant 0 : i32
    %c0_i32_1 = arith.constant 0 : i32
    return %c0_i32, %c0_i32_0 : i32, i32
  }
  func.func @transform_5(%arg0: i32) -> (i32, i32) {
    %c0_i32 = arith.constant 0 : i32
    %c0_i32_0 = arith.constant 0 : i32
    %c0_i32_1 = arith.constant 0 : i32
    return %c0_i32, %c0_i32_0 : i32, i32
  }
  func.func @transform_6(%arg0: i32) -> (i32, i32) {
    %c0_i32 = arith.constant 0 : i32
    %c0_i32_0 = arith.constant 0 : i32
    %c0_i32_1 = arith.constant 0 : i32
    return %c0_i32, %c0_i32_0 : i32, i32
  }
  func.func @transform_7(%arg0: i32) -> (i32, i32) {
    %c0_i32 = arith.constant 0 : i32
    %c0_i32_0 = arith.constant 0 : i32
    return %arg0, %c0_i32 : i32, i32
  }
}

</mosaic_0001>

<bundles_post_ra>
// kernel: tpu_custom_call.1
= control target key start
LH: loop header
LB: loop body
LE: loop exit
PB: predicated region body
PF: predicated region fallthrough
CT: control target
= control target key end

     0   :  { %12 = vsyncpa [#allocation3], 0  ;;  %s1561_s0 = inlined_call_operand.hbm [shape: f32[16,32], index: 0, kind: input, shape index: {}]   ;;  %s1562_s1 = inlined_call_operand.hbm [shape: f32[32,128], index: 1, kind: input, shape index: {}]   ;;  %s1563_s2 = inlined_call_operand.vmem [shape: f32[1,128], index: 2, kind: input, shape index: {}]   ;;  %s1564_s3 = inlined_call_operand.hbm [shape: f32[128,128], index: 3, kind: input, shape index: {}]   ;;  %s1565_s4 = inlined_call_operand.vmem [shape: f32[1,128], index: 4, kind: input, shape index: {}]   ;;  %s1566_s5 = inlined_call_operand.hbm [shape: f32[128,128], index: 5, kind: input, shape index: {}]   ;;  %s1567_s6 = inlined_call_operand.vmem [shape: f32[1,128], index: 6, kind: input, shape index: {}]   ;;  %s1568_s7 = inlined_call_operand.hbm [shape: f32[16,16], index: 7, kind: output, shape index: {}]  }
   0x1   :  { %14 = vsyncpa [#allocation3 + $0x1], 0 }
   0x2   :  { %15 = vsyncpa [#allocation6], 0 }
   0x3   :  { %16 = vsyncpa [#allocation9], 0 }
   0x4   :  { %17 = vsyncpa [#allocation4], 0 }
   0x5   :  { %19 = vsyncpa [#allocation4 + $0x1], 0  ;;  %s1261_s24 = smov 0   ;;  %s1263_s25 = smov 0  }
   0x6   :  { %s1265_s26 = smov 0   ;;  %s1267_s27 = smov 0  }
   0x7 LB: > { %s1282_s28 = sadd.s32 4294967295, %s1209_s27   ;;  %s738_s29 = sadd.s32 4294967294, %s1209_s27   ;;  %s1209_s27 = sphi %s1267_s27, %s1594_s27   ;;  %s1205_s26 = sphi %s1265_s26, %s1593_s26   ;;  %s1201_s25 = sphi %s1263_s25, %s1592_s25   ;;  %s1197_s24 = sphi %s1261_s24, %s1591_s24  }
   0x8   : > { %p45_p0 = scmp.ne.s32.totalorder %s1201_s25, %s1197_s24  ;;  %p1569_p1 = scmp.eq.s32.totalorder %s1282_s28, 0 }
   0x9   : > { %p201_p3 = scmp.eq.s32.totalorder %s738_s29, 1  ;;  %p739_p5 = scmp.ge.s32.totalorder %s1209_s27, 1 }
   0xa   : > { %p1291_p4 = por %p1569_p1, %p45_p0  ;;  %p208_p7 = scmp.lt.s32.totalorder %s1209_s27, 3 }
   0xb   : > { %p1296_p6 = por %p201_p3, %p45_p0  ;;  %s1211_s10 = smov [#allocation5]  }
   0xc   : > { %s1573_s30 = scalar_select %p1291_p4, 1, 0 }
   0xd   : > { %s1574_s8 = scalar_select %p1296_p6, 1, 0 }
   0xe   : > { %p1301_p8 = pnand %p739_p5, %p208_p7  ;;  %s220_s11 = sshll.u32 %s1211_s10, 4  ;;  %s1305_s11 = int_to_ptr.vmem [resolvable:$true] %s220_s11 }
   0xf   : > { %1575 = sst [smem:[#allocation15_spill]] %s1574_s8  ;;  %s1212_s13 = smov [#allocation7]  }
  0x10   : > { %s1576_s9 = scalar_select %p1301_p8, 1, 0 }
  0x11   : > { %p951_p9 = pneg %p1301_p8  ;;  %s236_s14 = sshll.u32 %s1212_s13, 4  ;;  %s1316_s14 = int_to_ptr.vmem [resolvable:$true] %s236_s14 }
  0x12   : > { %s1213_s15 = smov [#allocation8]   ;;  %s1021_s19 = scalar_lea.hbm %s1562_s1, 512 }
  0x13   : > { %p1312_p11 = pnand %p951_p9, %p1569_p1  ;;  %s1318_s16 = sshll.u32 %s1213_s15, 4  ;;  %s253_s16 = int_to_ptr.vmem [resolvable:$true] %s1318_s16 }
  0x14   : > { %p1022_p12 = scmp.ne.s32.totalorder %s1562_s1, %s1021_s19  ;;  %p1028_p5 = scmp.lt.u32.totalorder %s1021_s19, %s1562_s1 }
  0x15   : > { %p1328_p13 = pneg %p1312_p11 }
  0x17   : > { %p1024_p0 = pnand %p1328_p13, %p1022_p12 }
  0x19   : > { %p1025_p3 = pneg %p1024_p0 }
  0x1b   : > { %p1030_p7 = pnand %p1028_p5, %p1025_p3 }
  0x1d   : > { %1033 = shalt.err (!%p1030_p7)
}
  0x1e   : > { %s1034_s10 = scalar_lea.vmem %s1305_s11, 512  ;;  %p1042_p2 = scmp.lt.s32.totalorder %s1305_s11, %s1305_s11 }
  0x1f   : > { %p1035_p9 = scmp.ne.s32.totalorder %s1305_s11, %s1034_s10  ;;  %p1043_p6 = scmp.lt.s32.totalorder %s1034_s10, %s1034_s10 }
  0x21   : > { %p1037_p10 = pnand %p1035_p9, %p1328_p13  ;;  %p1044_p12 = por %p1043_p6, %p1042_p2 }
  0x23   : > { %p1038_p1 = pneg %p1037_p10 }
  0x25   : > { %p1045_p0 = pnand %p1044_p12, %p1038_p1 }
  0x27   : > { %1048 = shalt.err (!%p1045_p0)
}
  0x28   : > { %s1214_s13 = smov 128   ;;  %s1215_s15 = smov 8  }
  0x29   : > { %954 = dma.hbm_to_vmem [thread:$0]  (!%p1312_p11), %s1562_s1, 512, %s1305_s11, [#allocation6], %s1214_s13, %s1214_s13, %s1215_s15  }
  0x2a   : > { %s1049_s21 = scalar_lea.hbm %s1564_s3, 2048 }
  0x2b   : > { %p1050_p1 = scmp.ne.s32.totalorder %s1564_s3, %s1049_s21  ;;  %p1056_p10 = scmp.lt.u32.totalorder %s1049_s21, %s1564_s3 }
  0x2d   : > { %p1052_p2 = pnand %p1050_p1, %p1328_p13 }
  0x2f   : > { %p1053_p6 = pneg %p1052_p2 }
  0x31   : > { %p1058_p3 = pnand %p1056_p10, %p1053_p6 }
  0x33   : > { %1061 = shalt.err (!%p1058_p3)
}
  0x34   : > { %s1062_s11 = scalar_lea.vmem %s1316_s14, 2048  ;;  %p1070_p12 = scmp.lt.s32.totalorder %s1316_s14, %s1316_s14 }
  0x35   : > { %p1063_p5 = scmp.ne.s32.totalorder %s1316_s14, %s1062_s11  ;;  %p1071_p0 = scmp.lt.s32.totalorder %s1062_s11, %s1062_s11 }
  0x37   : > { %p1065_p7 = pnand %p1063_p5, %p1328_p13  ;;  %p1072_p1 = por %p1071_p0, %p1070_p12 }
  0x39   : > { %p1066_p9 = pneg %p1065_p7 }
  0x3b   : > { %p1073_p2 = pnand %p1072_p1, %p1066_p9 }
  0x3d   : > { %1076 = shalt.err (!%p1073_p2)
}
  0x3e   : > { %957 = dma.hbm_to_vmem [thread:$0]  (!%p1312_p11), %s1564_s3, 2048, %s1316_s14, [#allocation6], %s1214_s13, %s1214_s13, %s1215_s15  }
  0x3f   : > { %s1077_s20 = scalar_lea.hbm %s1566_s5, 2048 }
  0x40   : > { %p1078_p6 = scmp.ne.s32.totalorder %s1566_s5, %s1077_s20  ;;  %p1084_p5 = scmp.lt.u32.totalorder %s1077_s20, %s1566_s5 }
  0x42   : > { %p1080_p10 = pnand %p1078_p6, %p1328_p13 }
  0x44   : > { %p1081_p3 = pneg %p1080_p10 }
  0x46   : > { %p1086_p7 = pnand %p1084_p5, %p1081_p3 }
  0x48   : > { %1089 = shalt.err (!%p1086_p7)
}
  0x49   : > { %s1090_s11 = scalar_lea.vmem %s253_s16, 2048  ;;  %p1098_p1 = scmp.lt.s32.totalorder %s253_s16, %s253_s16 }
  0x4a   : > { %p1091_p9 = scmp.ne.s32.totalorder %s253_s16, %s1090_s11  ;;  %p1099_p2 = scmp.lt.s32.totalorder %s1090_s11, %s1090_s11 }
  0x4c   : > { %p1093_p12 = pnand %p1091_p9, %p1328_p13  ;;  %p1100_p4 = por %p1099_p2, %p1098_p1 }
  0x4e   : > { %p1094_p0 = pneg %p1093_p12 }
  0x50   : > { %p1101_p8 = pnand %p1100_p4, %p1094_p0 }
  0x52   : > { %1104 = shalt.err (!%p1101_p8)
}
  0x53   : > { %960 = dma.hbm_to_vmem [thread:$0]  (!%p1312_p11), %s1566_s5, 2048, %s253_s16, [#allocation9], %s1214_s13, %s1214_s13, %s1215_s15  }
  0x54   : > { %s1401_s22 = sadd.s32 1, %s1209_s27   ;;  %s32_s17 = sadd.s32 1, %s1205_s26 }
  0x55   : > { %s29_s12 = ssub.s32 %s1209_s27, %s1401_s22  ;;  %p39_p8 = scmp.ne.s32.totalorder %s1205_s26, %s1201_s25 }
  0x56   : > { %p30_p4 = scmp.eq.s32.totalorder %s29_s12, 0  ;;  %p40_p13 = scmp.eq.s32.totalorder %s1209_s27, 0 }
  0x57   : > { %p972_p6 = scmp.lt.s32.totalorder %s1209_s27, 2  ;;  %p1579_p3 = scmp.eq.s32.totalorder %s1282_s28, 1 }
  0x58   : > { %s1411_s18 = scalar_select %p30_p4, %s1205_s26, %s32_s17  }
  0x59   : > { %p41_p10 = por %p40_p13, %p39_p8  ;;  %p1415_p5 = por %p1579_p3, %p39_p8 }
  0x5a   : > { %s269_s20 = sand.u32 1, %s1205_s26   ;;  %s745_s21 = sshll.u32 %s1209_s27, 7 }
  0x5b   : > { %s744_s16 = sshll.u32 %s269_s20, 3  ;;  %s1424_s23 = scalar_lea.hbm %s1561_s0, %s745_s21 }
  0x5c   : > { %s273_s29 = scalar_lea.vmem [#allocation2], %s744_s16  ;;  %p1426_p11 = pnand %p972_p6, %p41_p10 }
  0x5d   : > { %s280_s10 = sshll.u32 %s273_s29, 4  ;;  %s270_s14 = scalar_lea.sflag [#allocation3], %s269_s20  ;;  %s1430_s10 = int_to_ptr.vmem [resolvable:$true] %s280_s10 }
  0x5e   : > { %s1105_s8 = scalar_lea.hbm %s1424_s23, 128  ;;  %p1107_p9 = pneg %p1426_p11 }
  0x5f   : > { %p1106_p7 = scmp.ne.s32.totalorder %s1424_s23, %s1105_s8  ;;  %s1110_s21 = scalar_lea.hbm %s1561_s0, 256 }
  0x60   : > { %p1111_p1 = scmp.lt.u32.totalorder %s1424_s23, %s1561_s0  ;;  %p1112_p2 = scmp.lt.u32.totalorder %s1110_s21, %s1105_s8 }
  0x61   : > { %p1108_p12 = pnand %p1107_p9, %p1106_p7  ;;  %p1114_p8 = scmp.lt.u32.totalorder %s1105_s8, %s1424_s23 }
  0x62   : > { %p1113_p4 = por %p1112_p2, %p1111_p1 }
  0x63   : > { %p1109_p0 = pneg %p1108_p12 }
  0x64   : > { %p1115_p13 = por %p1114_p8, %p1113_p4 }
  0x66   : > { %p1116_p6 = pnand %p1115_p13, %p1109_p0 }
  0x68   : > { %1119 = shalt.err (!%p1116_p6)
}
  0x69   : > { %s1120_s20 = scalar_lea.vmem %s1430_s10, 128  ;;  %s1216_s15 = smov [#allocation2]  }
  0x6a   : > { %p1121_p10 = scmp.ne.s32.totalorder %s1430_s10, %s1120_s20  ;;  %s1125_s29 = sshll.u32 %s1216_s15, 4  ;;  %s1126_s29 = int_to_ptr.vmem [resolvable:$false] %s1125_s29 }
  0x6b   : > { %s1127_s12 = scalar_lea.vmem %s1126_s29, 256  ;;  %p1128_p12 = scmp.lt.s32.totalorder %s1430_s10, %s1126_s29 }
  0x6c   : > { %p1123_p3 = pnand %p1121_p10, %p1107_p9  ;;  %p1129_p1 = scmp.lt.s32.totalorder %s1127_s12, %s1120_s20 }
  0x6e   : > { %p1124_p7 = pneg %p1123_p3  ;;  %p1130_p2 = por %p1129_p1, %p1128_p12 }
  0x70   : > { %p1131_p4 = pnand %p1130_p2, %p1124_p7 }
  0x72   : > { %1134 = shalt.err (!%p1131_p4)
}
  0x73   : > { %964 = dma.hbm_to_vmem [thread:$0]  (!%p1426_p11), %s1424_s23, 128, %s1430_s10, %s270_s14  }
  0x74   : > { %p1582_p0 = scmp.ne.s32.totalorder %s1576_s9, 0 }
  0x75   : > { %s1460_s8 = sand.u32 (!%p1582_p0), 1, %s1201_s25   ;;  %p1583_p9 = scmp.ne.s32.totalorder (!%p1582_p0), %s1573_s30, 0 }
  0x76   : > { %289 = sbr.rel (%p1582_p0) target bundleno = 831 (0x33f), region = 48  ;;  %s747_s17 = sshll.u32 (!%p1582_p0), %s1460_s8, 3 }
  0x77   : > { %s292_s21 = scalar_lea.sflag (!%p1582_p0), [#allocation3], %s1460_s8  ;;  %s1466_s16 = scalar_lea.vmem (!%p1582_p0), [#allocation2], %s747_s17 }
  0x7d   : > { %1180 = dma.done.wait (%p1583_p9), %s292_s21, 128  }
  0x7e   : > { %1182 = vsyncadd (%p1583_p9), %s292_s21, 4294967168  ;;  %p1584_p11 = scmp.eq.s32.totalorder %s1282_s28, 0 }
  0x80   : > { %1184 = dma.done.wait (%p1584_p11), [#allocation6], 2560   ;;  %p1585_p8 = pmov %p1584_p11 }
  0x82   : > { %1186 = vsyncadd (%p1585_p8), [#allocation6], 4294964736  ;;  %p1586_p13 = pmov %p1585_p8 }
  0x83   : > { %p1587_p6 = pmov %p1585_p8 }
  0x84   : > { %1188 = dma.done.wait (%p1586_p13), [#allocation9], 2048  }
  0x85   : > { %1190 = vsyncadd (%p1587_p6), [#allocation9], 4294965248  ;;  %v1217_v0 = vmov 0.0|0.0   ;;  %vm1218_vm0 = vmmov 0   ;;  %v1219_v1 = vmov 0.0   ;;  %v339_v2 = vld [vmem:[#allocation5] sm:$0xff] }
  0x86   : > { %881 = vmatprep.subr.bf16.mxu0 %v1217_v0  ;;  %808 = vmatprep.mubr.msk.f32.mxu0 %vm1218_vm0, %v1219_v1  ;;  %v340_v3 = vld [vmem:[#allocation5 + $0x8] sm:$0xff]  ;;  %v341_v4 = vld [vmem:[#allocation5 + $0x10] sm:$0xff]  ;;  %v342_v6 = vld [vmem:[#allocation5 + $0x18] sm:$0xff]  ;;  %vm350_vm1 = vcmask 261120   ;;  %s758_s13 = sshll.u32 %s1282_s28, 7  ;;  %s337_s20 = scalar_lea.vmem [#allocation10], %s747_s17 }
  0x87   : > { %887 = vmatprep.subr.bf16.mxu1 %v1217_v0  ;;  %843 = vmatprep.mubr.msk.f32.mxu1 %vm1218_vm0, %v1219_v1  ;;  %v882_v5 = vpack.c.bf16 %v340_v3, %v339_v2  ;;  %v425_v7 = vld [vmem:[#allocation7] sm:$0xff]  ;;  %v426_v8 = vld [vmem:[#allocation7 + $0x8] sm:$0xff]  ;;  %v427_v9 = vld [vmem:[#allocation7 + $0x10] sm:$0xff]  ;;  %v885_v11 = vpack.c.bf16 %v342_v6, %v341_v4  ;;  %s639_s15 = sshll.u32 %s337_s20, 4  ;;  %vm623_vm3 = vcmask 130048   ;;  %s1517_s21 = scalar_lea.hbm %s1568_s7, %s758_s13  ;;  %s1519_s15 = int_to_ptr.vmem [resolvable:$true] %s639_s15 }
  0x88   : > { %v428_v10 = vld [vmem:[#allocation7 + $0x18] sm:$0xff]  ;;  %v888_v12 = vpack.c.bf16 %v426_v8, %v425_v7  ;;  %v429_v14 = vld [vmem:[#allocation7 + $0x20] sm:$0xff]  ;;  %v430_v15 = vld [vmem:[#allocation7 + $0x28] sm:$0xff]  ;;  %s1135_s28 = scalar_lea.vmem %s1519_s15, 128  ;;  %s1220_s17 = smov [#allocation10]  }
  0x89   : > { %883 = vmatpush3.bf16.msra.mxu0 %v882_v5  ;;  %v891_v13 = vpack.c.bf16 %v428_v10, %v427_v9  ;;  %v338_v16 = vld [vmem:[%s1466_s16] sm:$0xff]  ;;  %v894_v17 = vpack.c.bf16 %v430_v15, %v429_v14  ;;  %v433_v21 = vld [vmem:[#allocation7 + $0x40] sm:$0xff]  ;;  %v434_v22 = vld [vmem:[#allocation7 + $0x48] sm:$0xff]  ;;  %v613_v10 = vlaneseq  ;;  %s626_s16 = scalar_lea.sflag [#allocation4], %s1460_s8  ;;  %p1136_p10 = scmp.ne.s32.totalorder %s1519_s15, %s1135_s28 }
  0x8a   : > { %884 = vmatprep.subr.bf16.mxu0 %v1217_v0  ;;  %889 = vmatpush3.bf16.msra.mxu1 %v888_v12  ;;  %v431_v18 = vld [vmem:[#allocation7 + $0x30] sm:$0xff]  ;;  %v432_v19 = vld [vmem:[#allocation7 + $0x38] sm:$0xff]  ;;  %v900_v23 = vpack.c.bf16 %v434_v22, %v433_v21  ;;  %v437_v27 = vld [vmem:[#allocation7 + $0x60] sm:$0xff]  ;;  %s1139_s30 = sshll.u32 %s1220_s17, 4  ;;  %s1140_s30 = int_to_ptr.vmem [resolvable:$false] %s1139_s30 }
  0x8b   : > { %890 = vmatprep.subr.bf16.mxu1 %v1217_v0  ;;  %v897_v20 = vpack.c.bf16 %v432_v19, %v431_v18  ;;  %v435_v24 = vld [vmem:[#allocation7 + $0x50] sm:$0xff]  ;;  %v436_v25 = vld [vmem:[#allocation7 + $0x58] sm:$0xff]  ;;  %v438_v28 = vld [vmem:[#allocation7 + $0x68] sm:$0xff]  ;;  %p1137_p3 = pnand %p1136_p10, %p1415_p5  ;;  %s1141_s9 = scalar_lea.vmem %s1140_s30, 256 }
  0x8c   : > { %v903_v26 = vpack.c.bf16 %v436_v25, %v435_v24  ;;  %v906_v29 = vpack.c.bf16 %v438_v28, %v437_v27  ;;  %v439_v30 = vld [vmem:[#allocation7 + $0x70] sm:$0xff]  ;;  %v440_v31 = vld [vmem:[#allocation7 + $0x78] sm:$0xff]  ;;  %v519_v33 = vld [vmem:[#allocation8] sm:$0xff]  ;;  %p1142_p12 = scmp.lt.s32.totalorder %s1519_s15, %s1140_s30  ;;  %p1143_p1 = scmp.lt.s32.totalorder %s1141_s9, %s1135_s28 }
  0x8d   : > { %886 = vmatpush3.bf16.msra.mxu0 %v885_v11  ;;  %v909_v32 = vpack.c.bf16 %v440_v31, %v439_v30  ;;  %v520_v34 = vld [vmem:[#allocation8 + $0x8] sm:$0xff]  ;;  %v521_v35 = vld [vmem:[#allocation8 + $0x10] sm:$0xff]  ;;  %v522_v37 = vld [vmem:[#allocation8 + $0x18] sm:$0xff]  ;;  %v614_v11 = vand.u32 127, %v613_v10  ;;  %p1138_p7 = pneg %p1137_p3 }
  0x8e   : > { %911 = vmatprep.subr.bf16.mxu0 %v1217_v0  ;;  %892 = vmatpush3.bf16.msra.mxu1 %v891_v13  ;;  %v912_v36 = vpack.c.bf16 %v520_v34, %v519_v33  ;;  %v915_v38 = vpack.c.bf16 %v522_v37, %v521_v35  ;;  %v523_v39 = vld [vmem:[#allocation8 + $0x20] sm:$0xff]  ;;  %v524_v40 = vld [vmem:[#allocation8 + $0x28] sm:$0xff]  ;;  %v525_v42 = vld [vmem:[#allocation8 + $0x30] sm:$0xff]  ;;  %p1144_p2 = por %p1143_p1, %p1142_p12 }
  0x8f   : > { %893 = vmatprep.subr.bf16.mxu1 %v1217_v0  ;;  %v918_v41 = vpack.c.bf16 %v524_v40, %v523_v39  ;;  %v526_v43 = vld [vmem:[#allocation8 + $0x38] sm:$0xff]  ;;  %v527_v45 = vld [vmem:[#allocation8 + $0x40] sm:$0xff]  ;;  %v528_v46 = vld [vmem:[#allocation8 + $0x48] sm:$0xff]  ;;  %vm615_vm2 = vcmp.lt.s32.totalorder %v614_v11, 3 }
  0x90   : > { %809 = vmatmul.mubr.msk.f32.vlgmr.msra.gmra.mrb[0].mxu0 %vm350_vm1, %v338_v16  ;;  %v921_v44 = vpack.c.bf16 %v526_v43, %v525_v42  ;;  %v924_v47 = vpack.c.bf16 %v528_v46, %v527_v45  ;;  %v529_v48 = vld [vmem:[#allocation8 + $0x50] sm:$0xff]  ;;  %v530_v49 = vld [vmem:[#allocation8 + $0x58] sm:$0xff]  ;;  %v531_v51 = vld [vmem:[#allocation8 + $0x60] sm:$0xff]  ;;  %p1145_p4 = pnand %p1144_p2, %p1138_p7 }
  0x91   : > { %878 = vmatprep.mubr.msk.f32.mxu0 %vm1218_vm0, %v1219_v1  ;;  %913 = vmatpush3.bf16.msra.mxu0 %v912_v36  ;;  %v927_v50 = vpack.c.bf16 %v530_v49, %v529_v48  ;;  %v532_v52 = vld [vmem:[#allocation8 + $0x68] sm:$0xff]  ;;  %v752_v54 = vld [vmem:[%s1563_s2] ss:$0 sm:$0xff]  ;;  %v534_v60 = vld [vmem:[#allocation8 + $0x78] sm:$0xff] }
  0x92   : > { %895 = vmatpush3.bf16.msra.mxu1 %v894_v17  ;;  %914 = vmatprep.subr.bf16.mxu0 %v1217_v0  ;;  %v930_v53 = vpack.c.bf16 %v532_v52, %v531_v51  ;;  %v533_v59 = vld [vmem:[#allocation8 + $0x70] sm:$0xff] }
  0x93   : > { %896 = vmatprep.subr.bf16.mxu1 %v1217_v0  ;;  %v933_v61 = vpack.c.bf16 %v534_v60, %v533_v59  ;;  %v754_v62 = vld [vmem:[%s1565_s4] ss:$0 sm:$0xff] }
  0x94   : > { %v755_v3 = vld [vmem:[%s1567_s6] ss:$0 sm:$0xff] }
  0x95   : > { %916 = vmatpush3.bf16.msra.mxu0 %v915_v38 }
  0x96   : > { %898 = vmatpush3.bf16.msra.mxu1 %v897_v20  ;;  %917 = vmatprep.subr.bf16.mxu0 %v1217_v0 }
  0x97   : > { %899 = vmatprep.subr.bf16.mxu1 %v1217_v0 }
  0x99   : > { %919 = vmatpush3.bf16.msra.mxu0 %v918_v41 }
  0x9a   : > { %901 = vmatpush3.bf16.msra.mxu1 %v900_v23  ;;  %920 = vmatprep.subr.bf16.mxu0 %v1217_v0 }
  0x9b   : > { %902 = vmatprep.subr.bf16.mxu1 %v1217_v0 }
  0x9d   : > { %922 = vmatpush3.bf16.msra.mxu0 %v921_v44 }
  0x9e   : > { %904 = vmatpush3.bf16.msra.mxu1 %v903_v26  ;;  %923 = vmatprep.subr.bf16.mxu0 %v1217_v0 }
  0x9f   : > { %905 = vmatprep.subr.bf16.mxu1 %v1217_v0 }
  0xa1   : > { %925 = vmatpush3.bf16.msra.mxu0 %v924_v47 }
  0xa2   : > { %907 = vmatpush3.bf16.msra.mxu1 %v906_v29  ;;  %926 = vmatprep.subr.bf16.mxu0 %v1217_v0 }
  0xa3   : > { %908 = vmatprep.subr.bf16.mxu1 %v1217_v0 }
  0xa5   : > { %928 = vmatpush3.bf16.msra.mxu0 %v927_v50 }
  0xa6   : > { %910 = vmatpush3.bf16.msra.mxu1 %v909_v32  ;;  %929 = vmatprep.subr.bf16.mxu0 %v1217_v0 }
  0xa9   : > { %931 = vmatpush3.bf16.msra.mxu0 %v930_v53 }
  0xaa   : > { %932 = vmatprep.subr.bf16.mxu0 %v1217_v0 }
  0xad   : > { %934 = vmatpush3.bf16.msra.mxu0 %v933_v61 }
 0x163   : > { %v420_v55 = vpop.f32.mrb[0].mxu0 }
 0x164   : > { %v421_v56 = vadd.f32 %v752_v54, %v420_v55  ;;  %v810_v57 = vpop.f32.mrb[1].mxu0 }
 0x166   : > { %v424_v58 = vmax.f32 %v421_v56, 0.0 }
 0x168   : > { %844 = vmatmul.mubr.f32.vlgmr.msra.gmra.mrb[0].mxu1 %v424_v58 }
 0x23b   : > { %v514_v63 = vpop.f32.mrb[0].mxu1 }
 0x23c   : > { %v515_v0 = vadd.f32 %v754_v62, %v514_v63  ;;  %v845_v1 = vpop.f32.mrb[1].mxu1 }
 0x23e   : > { %v518_v2 = vmax.f32 %v515_v0, 0.0 }
 0x240   : > { %879 = vmatmul.mubr.f32.vlgmr.msra.gmra.mrb[2].mxu0 %v518_v2 }
 0x313   : > { %v602_v4 = vpop.f32.mrb[2].mxu0 }
 0x314   : > { %v612_v5 = vadd.f32 %v755_v3, %v602_v4  ;;  %v880_v6 = vpop.f32.mrb[3].mxu0 }
 0x316   : > { %v756_v7 = vmul.f32 -1.442695, %v612_v5 }
 0x318   : > { %1017 = vpow2.f32 %v756_v7 }
 0x322   : > { %v1018_v8 = vpop.eup %1017 }
 0x323   : > { %v619_v9 = vadd.f32 1.0, %v1018_v8 }
 0x325   : > { %1019 = vrcp.f32 %v619_v9 }
 0x32f   : > { %v1020_v12 = vpop.eup %1019 }
 0x330   : > { %v622_v13 = vsel %vm615_vm2, %v1020_v12, %v612_v5 }
 0x331   : > { %624 = vst.msk [vmem:[%s337_s20] sm:$0xff] %vm623_vm3, %v622_v13 }
 0x332   : > { %1148 = shalt.err (!%p1145_p4)
}
 0x333   : > { %s1149_s8 = scalar_lea.hbm %s1517_s21, 128  ;;  %s1153_s11 = scalar_lea.hbm %s1568_s7, 256 }
 0x334   : > { %p1150_p0 = scmp.ne.s32.totalorder %s1517_s21, %s1149_s8  ;;  %p1154_p8 = scmp.lt.u32.totalorder %s1517_s21, %s1568_s7 }
 0x335   : > { %p1155_p13 = scmp.lt.u32.totalorder %s1153_s11, %s1149_s8  ;;  %p1157_p10 = scmp.lt.u32.totalorder %s1149_s8, %s1517_s21 }
 0x336   : > { %p1151_p9 = pnand %p1150_p0, %p1415_p5 }
 0x337   : > { %p1156_p6 = por %p1155_p13, %p1154_p8 }
 0x338   : > { %p1152_p11 = pneg %p1151_p9 }
 0x339   : > { %p1158_p3 = por %p1157_p10, %p1156_p6 }
 0x33b   : > { %p1159_p7 = pnand %p1158_p3, %p1152_p11 }
 0x33d   : > { %1162 = shalt.err (!%p1159_p7)
}
 0x33e   : > { %949 = dma.vmem_to_hbm [thread:$0]  (%p1415_p5), %s1519_s15, 128, %s1517_s21, %s626_s16  }
 0x33f PF: > { %s1588_s20 = sld [smem:[#allocation15_spill]]  ;;  %s651_s29 = sand.u32 1, %s1197_s24  }
 0x340   : > { %p1590_p1 = scmp.ge.s32.totalorder %s1209_s27, 2  ;;  %s652_s12 = scalar_lea.sflag [#allocation4], %s651_s29 }
 0x345   : > { %p1589_p12 = scmp.ne.s32.totalorder %s1588_s20, 0 }
 0x347   : > { %p966_p2 = pnand %p1590_p1, %p1589_p12 }
 0x349   : > { %1192 = dma.done.wait (!%p966_p2), %s652_s12, 128  }
 0x34a   : > { %1194 = vsyncadd (!%p966_p2), %s652_s12, 4294967168  ;;  %p22_p4 = scmp.ge.s32.totalorder %s1401_s22, 4   ;;  %s1591_s24 = smov %s1201_s25 }
 0x34b   : > { %s1592_s25 = smov %s1205_s26  ;;  %s1593_s26 = smov %s1411_s18 }
 0x34c   : > { %s1594_s27 = smov %s1401_s22  ;;  %24 = sbr.rel (!%p22_p4) target bundleno = 7 (0x7), region = 105 }
 0x353   :  { %657 = vsyncpa [#allocation3], 1 }
 0x354   :  { %659 = vsyncpa [#allocation3 + $0x1], 1 }
 0x355   :  { %660 = vsyncpa [#allocation6], 1 }
 0x356   :  { %661 = vsyncpa [#allocation9], 1 }
 0x357   :  { %662 = vsyncpa [#allocation4], 1 }
 0x358   :  { %664 = vsyncpa [#allocation4 + $0x1], 1 }

</bundles_post_ra>
